<compile_context>
chip_gen: v7x
topology: tpu7x:2x2x1
jax: 0.10.0
libtpu: 0.0.40
codegen_flags: <defaults>
</compile_context>

<pallas_src>
import jax
import jax.numpy as jnp
from jax.experimental import pallas as pl
from jax.experimental.pallas import tpu as pltpu


def _round_up(x, m):
    return (x + m - 1) // m * m


def conv_stats_kernel(patches_ref, w_ref, conv_ref, sum_ref, sumsq_ref):
    """patches (4, K, T) bf16, w (Cout, K) bf16 ->
       conv (4, Cout, T) f32, per-tile channel sum / sumsq (1, Cout, 1) f32."""
    w = w_ref[...]
    s = None
    sq = None
    for p in range(4):                                   # 4 pool-window planes, unrolled
        conv_p = jnp.dot(w, patches_ref[p], preferred_element_type=jnp.float32)
        conv_ref[p] = conv_p                             # (Cout, T), lane-dense store
        ps = jnp.sum(conv_p, axis=1, keepdims=True)      # (Cout, 1)
        psq = jnp.sum(conv_p * conv_p, axis=1, keepdims=True)
        s = ps if s is None else s + ps
        sq = psq if sq is None else sq + psq
    sum_ref[...] = s[None]
    sumsq_ref[...] = sq[None]


def bn_relu_pool_kernel(conv_ref, scale_ref, shift_ref, out_ref):
    """conv (4, Cout, T) f32, scale/shift (Cout, 1) f32 -> out (Cout, T) f32."""
    scale = scale_ref[...]
    shift = shift_ref[...]
    y = None
    for p in range(4):
        yp = jnp.maximum(conv_ref[p] * scale + shift, 0.0)   # BN (folded) + ReLU
        y = yp if y is None else jnp.maximum(y, yp)          # 2x2 max-pool over planes
    out_ref[...] = y


def relation_conv_block(x, w, b, gamma, beta, *, padding=0, eps=1e-5,
                        tile_target=1024):
    """x: (N, Cin, H, W) f32 NCHW.  Returns (N, Cout, Hp, Wp) f32 NCHW."""
    del b  # cancelled exactly by training-mode BatchNorm mean subtraction
    N, Cin, H, W = x.shape
    Cout = w.shape[0]

    if padding > 0:
        x = jnp.pad(x, ((0, 0), (0, 0), (padding, padding), (padding, padding)))
        H, W = H + 2 * padding, W + 2 * padding

    Ho, Wo = H - 2, W - 2            # conv output (kernel=3, stride=1)
    # TODO(synk): odd conv-output sizes (MaxPool2d drops trailing row/col) unsupported.
    assert Ho % 2 == 0 and Wo % 2 == 0, "conv output spatial dims must be even"
    Hp, Wp = Ho // 2, Wo // 2
    Np = N * Hp * Wp                 # pooled positions
    K = Cin * 9

    # ---- im2col glue (plain XLA) -------------------------------------------
    # TODO(synk): implicit GEMM (halo'd NHWC tiles + 9 shifted matmuls in-kernel)
    # would cut the ~9x-inflated HBM traffic on this patches array.
    cols = [x[:, :, kh:kh + Ho, kw:kw + Wo] for kh in range(3) for kw in range(3)]
    patches = jnp.stack(cols, axis=2)                 # (N, Cin, 9, Ho, Wo)
    patches = patches.reshape(N, K, Ho, Wo)           # K index = c*9 + kh*3 + kw
    patches = patches.reshape(N, K, Hp, 2, Wp, 2)
    patches = patches.transpose(3, 5, 1, 0, 2, 4)     # (2, 2, K, N, Hp, Wp) plane-major
    patches = patches.reshape(4, K, Np).astype(jnp.bfloat16)

    # ---- position-axis padding / tiling (positions sit on the lane axis) ---
    Np_pad = max(128, _round_up(Np, 128))
    tile = min(tile_target, Np_pad)
    Np_pad = _round_up(Np_pad, tile)
    num_tiles = Np_pad // tile
    if Np_pad != Np:
        patches = jnp.pad(patches, ((0, 0), (0, 0), (0, Np_pad - Np)))

    w2 = w.reshape(Cout, K).astype(jnp.bfloat16)      # bf16 MXU operand

    cparams = pltpu.CompilerParams(
        dimension_semantics=("parallel",),            # tiles shardable across TCs (v7x)
        vmem_limit_bytes=32 * 1024 * 1024)

    # ---- pass 1: conv + per-tile per-channel sums ---------------------------
    conv, sums, sumsqs = pl.pallas_call(
        conv_stats_kernel,
        out_shape=(jax.ShapeDtypeStruct((4, Cout, Np_pad), jnp.float32),
                   jax.ShapeDtypeStruct((num_tiles, Cout, 1), jnp.float32),
                   jax.ShapeDtypeStruct((num_tiles, Cout, 1), jnp.float32)),
        grid=(num_tiles,),
        in_specs=[pl.BlockSpec((4, K, tile), lambda j: (0, 0, j)),
                  pl.BlockSpec((Cout, K), lambda j: (0, 0))],
        out_specs=(pl.BlockSpec((4, Cout, tile), lambda j: (0, 0, j)),
                   pl.BlockSpec((1, Cout, 1), lambda j: (j, 0, 0)),
                   pl.BlockSpec((1, Cout, 1), lambda j: (j, 0, 0))),
        compiler_params=cparams,
    )(patches, w2)

    # ---- BatchNorm batch statistics (tiny per-channel math, plain XLA) -----
    count = 4.0 * Np                                  # padded positions contribute 0
    mean = sums[:, :, 0].sum(axis=0) / count          # (Cout,)
    var = jnp.maximum(sumsqs[:, :, 0].sum(axis=0) / count - mean * mean, 0.0)
    scale = gamma.astype(jnp.float32) * jax.lax.rsqrt(var + eps)
    shift = beta.astype(jnp.float32) - mean * scale

    # ---- pass 2: normalize + ReLU + 2x2 max-pool ----------------------------
    out = pl.pallas_call(
        bn_relu_pool_kernel,
        out_shape=jax.ShapeDtypeStruct((Cout, Np_pad), jnp.float32),
        grid=(num_tiles,),
        in_specs=[pl.BlockSpec((4, Cout, tile), lambda j: (0, 0, j)),
                  pl.BlockSpec((Cout, 1), lambda j: (0, 0)),
                  pl.BlockSpec((Cout, 1), lambda j: (0, 0))],
        out_specs=pl.BlockSpec((Cout, tile), lambda j: (0, j)),
        compiler_params=cparams,
    )(conv, scale.reshape(Cout, 1), shift.reshape(Cout, 1))

    # back to NCHW
    return out[:, :Np].reshape(Cout, N, Hp, Wp).transpose(1, 0, 2, 3)


def reference(x, w, b, gamma, beta, *, padding=0, eps=1e-5):
    """Pure-JAX reference matching PyTorch forward (training-mode BN)."""
    conv = jax.lax.conv_general_dilated(
        x, w, window_strides=(1, 1), padding=[(padding, padding)] * 2,
        dimension_numbers=("NCHW", "OIHW", "NCHW")) + b[None, :, None, None]
    mean = conv.mean(axis=(0, 2, 3), keepdims=True)
    var = jnp.square(conv - mean).mean(axis=(0, 2, 3), keepdims=True)
    y = gamma[None, :, None, None] * (conv - mean) * jax.lax.rsqrt(var + eps) \
        + beta[None, :, None, None]
    y = jnp.maximum(y, 0.0)
    return jax.lax.reduce_window(y, -jnp.inf, jax.lax.max,
                                 (1, 1, 2, 2), (1, 1, 2, 2), "VALID")


if __name__ == "__main__":
    # RelationConvBlock(indim=4, outdim=8, padding=0) on a (2, 4, 16, 16) input.
    N, Cin, Cout, H, W = 2, 4, 8, 16, 16
    padding = 0

    key = jax.random.PRNGKey(0)
    kx, kw, kb = jax.random.split(key, 3)
    x = jax.random.normal(kx, (N, Cin, H, W), dtype=jnp.float32)

    # Deterministic parameter init (mimics backbone.init_layer: kaiming-style conv
    # weights, BN gamma=1 / beta=0; conv bias small).
    fan_in = Cin * 3 * 3
    w = jax.random.normal(kw, (Cout, Cin, 3, 3), dtype=jnp.float32) * jnp.sqrt(2.0 / fan_in)
    b = jax.random.uniform(kb, (Cout,), dtype=jnp.float32,
                           minval=-1.0 / jnp.sqrt(fan_in), maxval=1.0 / jnp.sqrt(fan_in))
    gamma = jnp.ones((Cout,), dtype=jnp.float32)
    beta = jnp.zeros((Cout,), dtype=jnp.float32)

    out = relation_conv_block(x, w, b, gamma, beta, padding=padding)
    out = jax.block_until_ready(out)

    ref = jax.block_until_ready(reference(x, w, b, gamma, beta, padding=padding))
    assert out.shape == ref.shape == (N, Cout, (H - 2) // 2, (W - 2) // 2)
    # bf16 MXU operands -> slightly looser tolerance than the all-f32 version.
    assert jnp.allclose(out, ref, rtol=3e-2, atol=3e-2), "mismatch vs. JAX reference"

    print("KERNEL_OK")
</pallas_src>

<mosaic_0001>
module attributes {stable_mosaic.version = 11 : i64} {
  func.func @conv_stats_kernel(%arg0: i32, %arg1: memref<4x36x128xbf16, #tpu.memory_space<vmem>>, %arg2: memref<8x36xbf16, #tpu.memory_space<vmem>>, %arg3: memref<4x8x128xf32, #tpu.memory_space<vmem>>, %arg4: memref<1x8x1xf32, #tpu.memory_space<vmem>>, %arg5: memref<1x8x1xf32, #tpu.memory_space<vmem>>) attributes {dimension_semantics = [#tpu.dimension_semantics<parallel>], iteration_bounds = array<i64: 1>, scalar_prefetch = 0 : i64, scratch_operands = 0 : i64, tpu.core_type = #tpu.core_type<tc>, window_params = [{transform_indices = @transform_0, window_bounds = array<i64: 4, 36, 128>}, {pipeline_mode = #tpu.pipeline_mode<synchronous>, transform_indices = @transform_1, window_bounds = array<i64: 8, 36>}, {transform_indices = @transform_2, window_bounds = array<i64: 4, 8, 128>}, {transform_indices = @transform_3, window_bounds = array<i64: 1, 8, 1>}, {transform_indices = @transform_4, window_bounds = array<i64: 1, 8, 1>}]} {
    %c0 = arith.constant 0 : index
    %c0_0 = arith.constant 0 : index
    %0 = vector.load %arg2[%c0, %c0_0] : memref<8x36xbf16, #tpu.memory_space<vmem>>, vector<8x36xbf16>
    %c0_1 = arith.constant 0 : index
    %c0_2 = arith.constant 0 : index
    %c0_3 = arith.constant 0 : index
    %1 = vector.load %arg1[%c0_1, %c0_2, %c0_3] : memref<4x36x128xbf16, #tpu.memory_space<vmem>>, vector<1x36x128xbf16>
    %2 = vector.shape_cast %1 : vector<1x36x128xbf16> to vector<36x128xbf16>
    %cst = arith.constant dense<0.000000e+00> : vector<8x128xf32>
    %3 = tpu.matmul %0, %2, %cst {dimension_numbers = #tpu.dot_dimension_numbers<[1], [0], [0], [1], [0, 0, 1, 1], [], []>} : vector<8x36xbf16>, vector<36x128xbf16>, vector<8x128xf32> -> vector<8x128xf32>
    %c0_4 = arith.constant 0 : index
    %c0_5 = arith.constant 0 : index
    %c0_6 = arith.constant 0 : index
    %4 = vector.load %arg3[%c0_4, %c0_5, %c0_6] : memref<4x8x128xf32, #tpu.memory_space<vmem>>, vector<1x8x128xf32>
    %5 = vector.shape_cast %4 : vector<1x8x128xf32> to vector<8x128xf32>
    %6 = vector.shape_cast %3 : vector<8x128xf32> to vector<1x8x128xf32>
    tpu.vector_store %arg3[%c0_4, %c0_5, %c0_6], %6 {strides = array<i32>} : memref<4x8x128xf32, #tpu.memory_space<vmem>>, vector<1x8x128xf32>,
    %cst_7 = arith.constant dense<0.000000e+00> : vector<8xf32>
    %7 = vector.multi_reduction <add>, %3, %cst_7 [1] : vector<8x128xf32> to vector<8xf32>
    %8 = vector.shape_cast %7 : vector<8xf32> to vector<8x1xf32>
    %9 = arith.mulf %3, %3 : vector<8x128xf32>
    %cst_8 = arith.constant dense<0.000000e+00> : vector<8xf32>
    %10 = vector.multi_reduction <add>, %9, %cst_8 [1] : vector<8x128xf32> to vector<8xf32>
    %11 = vector.shape_cast %10 : vector<8xf32> to vector<8x1xf32>
    %c1 = arith.constant 1 : index
    %c0_9 = arith.constant 0 : index
    %c0_10 = arith.constant 0 : index
    %12 = vector.load %arg1[%c1, %c0_9, %c0_10] : memref<4x36x128xbf16, #tpu.memory_space<vmem>>, vector<1x36x128xbf16>
    %13 = vector.shape_cast %12 : vector<1x36x128xbf16> to vector<36x128xbf16>
    %cst_11 = arith.constant dense<0.000000e+00> : vector<8x128xf32>
    %14 = tpu.matmul %0, %13, %cst_11 {dimension_numbers = #tpu.dot_dimension_numbers<[1], [0], [0], [1], [0, 0, 1, 1], [], []>} : vector<8x36xbf16>, vector<36x128xbf16>, vector<8x128xf32> -> vector<8x128xf32>
    %c1_12 = arith.constant 1 : index
    %c0_13 = arith.constant 0 : index
    %c0_14 = arith.constant 0 : index
    %15 = vector.load %arg3[%c1_12, %c0_13, %c0_14] : memref<4x8x128xf32, #tpu.memory_space<vmem>>, vector<1x8x128xf32>
    %16 = vector.shape_cast %15 : vector<1x8x128xf32> to vector<8x128xf32>
    %17 = vector.shape_cast %14 : vector<8x128xf32> to vector<1x8x128xf32>
    tpu.vector_store %arg3[%c1_12, %c0_13, %c0_14], %17 {strides = array<i32>} : memref<4x8x128xf32, #tpu.memory_space<vmem>>, vector<1x8x128xf32>,
    %cst_15 = arith.constant dense<0.000000e+00> : vector<8xf32>
    %18 = vector.multi_reduction <add>, %14, %cst_15 [1] : vector<8x128xf32> to vector<8xf32>
    %19 = vector.shape_cast %18 : vector<8xf32> to vector<8x1xf32>
    %20 = arith.mulf %14, %14 : vector<8x128xf32>
    %cst_16 = arith.constant dense<0.000000e+00> : vector<8xf32>
    %21 = vector.multi_reduction <add>, %20, %cst_16 [1] : vector<8x128xf32> to vector<8xf32>
    %22 = vector.shape_cast %21 : vector<8xf32> to vector<8x1xf32>
    %23 = arith.addf %8, %19 : vector<8x1xf32>
    %24 = arith.addf %11, %22 : vector<8x1xf32>
    %c2 = arith.constant 2 : index
    %c0_17 = arith.constant 0 : index
    %c0_18 = arith.constant 0 : index
    %25 = vector.load %arg1[%c2, %c0_17, %c0_18] : memref<4x36x128xbf16, #tpu.memory_space<vmem>>, vector<1x36x128xbf16>
    %26 = vector.shape_cast %25 : vector<1x36x128xbf16> to vector<36x128xbf16>
    %cst_19 = arith.constant dense<0.000000e+00> : vector<8x128xf32>
    %27 = tpu.matmul %0, %26, %cst_19 {dimension_numbers = #tpu.dot_dimension_numbers<[1], [0], [0], [1], [0, 0, 1, 1], [], []>} : vector<8x36xbf16>, vector<36x128xbf16>, vector<8x128xf32> -> vector<8x128xf32>
    %c2_20 = arith.constant 2 : index
    %c0_21 = arith.constant 0 : index
    %c0_22 = arith.constant 0 : index
    %28 = vector.load %arg3[%c2_20, %c0_21, %c0_22] : memref<4x8x128xf32, #tpu.memory_space<vmem>>, vector<1x8x128xf32>
    %29 = vector.shape_cast %28 : vector<1x8x128xf32> to vector<8x128xf32>
    %30 = vector.shape_cast %27 : vector<8x128xf32> to vector<1x8x128xf32>
    tpu.vector_store %arg3[%c2_20, %c0_21, %c0_22], %30 {strides = array<i32>} : memref<4x8x128xf32, #tpu.memory_space<vmem>>, vector<1x8x128xf32>,
    %cst_23 = arith.constant dense<0.000000e+00> : vector<8xf32>
    %31 = vector.multi_reduction <add>, %27, %cst_23 [1] : vector<8x128xf32> to vector<8xf32>
    %32 = vector.shape_cast %31 : vector<8xf32> to vector<8x1xf32>
    %33 = arith.mulf %27, %27 : vector<8x128xf32>
    %cst_24 = arith.constant dense<0.000000e+00> : vector<8xf32>
    %34 = vector.multi_reduction <add>, %33, %cst_24 [1] : vector<8x128xf32> to vector<8xf32>
    %35 = vector.shape_cast %34 : vector<8xf32> to vector<8x1xf32>
    %36 = arith.addf %23, %32 : vector<8x1xf32>
    %37 = arith.addf %24, %35 : vector<8x1xf32>
    %c3 = arith.constant 3 : index
    %c0_25 = arith.constant 0 : index
    %c0_26 = arith.constant 0 : index
    %38 = vector.load %arg1[%c3, %c0_25, %c0_26] : memref<4x36x128xbf16, #tpu.memory_space<vmem>>, vector<1x36x128xbf16>
    %39 = vector.shape_cast %38 : vector<1x36x128xbf16> to vector<36x128xbf16>
    %cst_27 = arith.constant dense<0.000000e+00> : vector<8x128xf32>
    %40 = tpu.matmul %0, %39, %cst_27 {dimension_numbers = #tpu.dot_dimension_numbers<[1], [0], [0], [1], [0, 0, 1, 1], [], []>} : vector<8x36xbf16>, vector<36x128xbf16>, vector<8x128xf32> -> vector<8x128xf32>
    %c3_28 = arith.constant 3 : index
    %c0_29 = arith.constant 0 : index
    %c0_30 = arith.constant 0 : index
    %41 = vector.load %arg3[%c3_28, %c0_29, %c0_30] : memref<4x8x128xf32, #tpu.memory_space<vmem>>, vector<1x8x128xf32>
    %42 = vector.shape_cast %41 : vector<1x8x128xf32> to vector<8x128xf32>
    %43 = vector.shape_cast %40 : vector<8x128xf32> to vector<1x8x128xf32>
    tpu.vector_store %arg3[%c3_28, %c0_29, %c0_30], %43 {strides = array<i32>} : memref<4x8x128xf32, #tpu.memory_space<vmem>>, vector<1x8x128xf32>,
    %cst_31 = arith.constant dense<0.000000e+00> : vector<8xf32>
    %44 = vector.multi_reduction <add>, %40, %cst_31 [1] : vector<8x128xf32> to vector<8xf32>
    %45 = vector.shape_cast %44 : vector<8xf32> to vector<8x1xf32>
    %46 = arith.mulf %40, %40 : vector<8x128xf32>
    %cst_32 = arith.constant dense<0.000000e+00> : vector<8xf32>
    %47 = vector.multi_reduction <add>, %46, %cst_32 [1] : vector<8x128xf32> to vector<8xf32>
    %48 = vector.shape_cast %47 : vector<8xf32> to vector<8x1xf32>
    %49 = arith.addf %36, %45 : vector<8x1xf32>
    %50 = arith.addf %37, %48 : vector<8x1xf32>
    %51 = vector.shape_cast %49 : vector<8x1xf32> to vector<1x8x1xf32>
    %c0_33 = arith.constant 0 : index
    %c0_34 = arith.constant 0 : index
    %c0_35 = arith.constant 0 : index
    %52 = vector.load %arg4[%c0_33, %c0_34, %c0_35] : memref<1x8x1xf32, #tpu.memory_space<vmem>>, vector<1x8x1xf32>
    tpu.vector_store %arg4[%c0_33, %c0_34, %c0_35], %51 {strides = array<i32>} : memref<1x8x1xf32, #tpu.memory_space<vmem>>, vector<1x8x1xf32>,
    %53 = vector.shape_cast %50 : vector<8x1xf32> to vector<1x8x1xf32>
    %c0_36 = arith.constant 0 : index
    %c0_37 = arith.constant 0 : index
    %c0_38 = arith.constant 0 : index
    %54 = vector.load %arg5[%c0_36, %c0_37, %c0_38] : memref<1x8x1xf32, #tpu.memory_space<vmem>>, vector<1x8x1xf32>
    tpu.vector_store %arg5[%c0_36, %c0_37, %c0_38], %53 {strides = array<i32>} : memref<1x8x1xf32, #tpu.memory_space<vmem>>, vector<1x8x1xf32>,
    return
  }
  func.func @transform_0(%arg0: i32) -> (i32, i32, i32) {
    %c0_i32 = arith.constant 0 : i32
    %c0_i32_0 = arith.constant 0 : i32
    %c0_i32_1 = arith.constant 0 : i32
    return %c0_i32, %c0_i32_0, %arg0 : i32, i32, i32
  }
  func.func @transform_1(%arg0: i32) -> (i32, i32) {
    %c0_i32 = arith.constant 0 : i32
    %c0_i32_0 = arith.constant 0 : i32
    %c0_i32_1 = arith.constant 0 : i32
    return %c0_i32, %c0_i32_0 : i32, i32
  }
  func.func @transform_2(%arg0: i32) -> (i32, i32, i32) {
    %c0_i32 = arith.constant 0 : i32
    %c0_i32_0 = arith.constant 0 : i32
    %c0_i32_1 = arith.constant 0 : i32
    return %c0_i32, %c0_i32_0, %arg0 : i32, i32, i32
  }
  func.func @transform_3(%arg0: i32) -> (i32, i32, i32) {
    %c0_i32 = arith.constant 0 : i32
    %c0_i32_0 = arith.constant 0 : i32
    %c0_i32_1 = arith.constant 0 : i32
    return %arg0, %c0_i32, %c0_i32_0 : i32, i32, i32
  }
  func.func @transform_4(%arg0: i32) -> (i32, i32, i32) {
    %c0_i32 = arith.constant 0 : i32
    %c0_i32_0 = arith.constant 0 : i32
    %c0_i32_1 = arith.constant 0 : i32
    return %arg0, %c0_i32, %c0_i32_0 : i32, i32, i32
  }
}

</mosaic_0001>

<bundles_post_ra>
// kernel: tpu_custom_call.1
= control target key start
LH: loop header
LB: loop body
LE: loop exit
PB: predicated region body
PF: predicated region fallthrough
CT: control target
= control target key end

     0   :  { %v465_v1 = vmov 0.0   ;;  %vm41_vm0 = vcmask 1041408   ;;  %vm466_vm1 = vmmov 0   ;;  %vm37_vm2 = vcmask 293888   ;;  %s564_s0 = inlined_call_operand.vmem [shape: bf16[4,36,128], index: 0, kind: input, shape index: {}]   ;;  %s565_s1 = inlined_call_operand.vmem [shape: bf16[8,36], index: 1, kind: input, shape index: {}]   ;;  %s566_s2 = inlined_call_operand.hbm [shape: f32[4,8,128], index: 2, kind: output, shape index: {0}]   ;;  %s567_s3 = inlined_call_operand.vmem [shape: f32[1,8,1], index: 3, kind: output, shape index: {1}]   ;;  %s568_s4 = inlined_call_operand.vmem [shape: f32[1,8,1], index: 4, kind: output, shape index: {2}]  }
   0x1   :  { %v429_v0 = vld [vmem:[%s564_s0] sm:$0xff]   ;;  %384 = vmatprep.subr.bf16.mxu0 %v465_v1  ;;  %394 = vmatprep.subr.bf16.mxu1 %v465_v1  ;;  %v430_v2 = vld [vmem:[%s564_s0 + $0x14] sm:$0xff]   ;;  %v431_v3 = vld [vmem:[%s564_s0 + $0x8] sm:$0xff]  }
   0x2   :  { %385 = vmatpush3.bf16.msra.mxu0 %v429_v0  ;;  %395 = vmatpush3.bf16.msra.mxu1 %v430_v2  ;;  %v432_v4 = vld [vmem:[%s564_s0 + $0x1c] sm:$0xff]   ;;  %v433_v5 = vld [vmem:[%s564_s0 + $0x10] ss:$0 sps:$4 sm:$0x33]   ;;  %v435_v10 = vld [vmem:[%s564_s0 + $0x28] sm:$0xff]  }
   0x3   :  { %386 = vmatprep.subr.bf16.mxu0 %v465_v1  ;;  %396 = vmatprep.subr.bf16.mxu1 %v465_v1  ;;  %v434_v6 = vld [vmem:[%s564_s0 + $0x24] ss:$0 sps:$4 sm:$0x33]   ;;  %v43_v7 = vsel %vm41_vm0, %v433_v5, 0  ;;  %v16_v9 = vld [vmem:[%s565_s1] sm:$0xf] }
   0x4   :  { %390 = vmatprep.mubr.msk.bf16.mxu0 %vm466_vm1, %v465_v1  ;;  %400 = vmatprep.mubr.msk.bf16.mxu1 %vm466_vm1, %v465_v1  ;;  %v113_v8 = vsel %vm41_vm0, %v434_v6, 0  ;;  %v436_v11 = vld [vmem:[%s564_s0 + $0x3c] sm:$0xff]  }
   0x6   :  { %387 = vmatpush3.bf16.msra.mxu0 %v431_v3  ;;  %397 = vmatpush3.bf16.msra.mxu1 %v432_v4 }
   0x7   :  { %388 = vmatprep.subr.bf16.mxu0 %v465_v1  ;;  %398 = vmatprep.subr.bf16.mxu1 %v465_v1 }
   0xa   :  { %389 = vmatpush3.bf16.msra.mxu0 %v43_v7  ;;  %399 = vmatpush3.bf16.msra.mxu1 %v113_v8 }
   0xb   :  { %404 = vmatprep.subr.bf16.mxu0 %v465_v1 }
   0xc   :  { %10 = vsyncpa [#allocation3], 0  ;;  %414 = vmatprep.subr.bf16.mxu1 %v465_v1  ;;  %v437_v12 = vld [vmem:[%s564_s0 + $0x30] sm:$0xff]   ;;  %v438_v13 = vld [vmem:[%s564_s0 + $0x44] sm:$0xff]  }
   0xd   :  { %391 = vmatmul.mubr.msk.bf16.vlgmr.msra.gmra.mrb[0].mxu0 %vm37_vm2, %v16_v9  ;;  %401 = vmatmul.mubr.msk.bf16.vlgmr.msra.gmra.mrb[0].mxu1 %vm37_vm2, %v16_v9  ;;  %v439_v14 = vld [vmem:[%s564_s0 + $0x38] ss:$0 sps:$4 sm:$0x33]   ;;  %v440_v15 = vld [vmem:[%s564_s0 + $0x4c] ss:$0 sps:$4 sm:$0x33]  }
   0xe   :  { %405 = vmatpush3.bf16.msra.mxu0 %v435_v10  ;;  %415 = vmatpush3.bf16.msra.mxu1 %v436_v11  ;;  %v186_v16 = vsel %vm41_vm0, %v439_v14, 0  ;;  %v259_v17 = vsel %vm41_vm0, %v440_v15, 0  ;;  %s467_s0 = smov [#allocation2]  }
   0xf   :  { %406 = vmatprep.subr.bf16.mxu0 %v465_v1  ;;  %416 = vmatprep.subr.bf16.mxu1 %v465_v1  ;;  %s318_s14 = sshll.u32 %s467_s0, 4  ;;  %s319_s14 = int_to_ptr.vmem [resolvable:$true] %s318_s14 }
  0x10   :  { %410 = vmatprep.mubr.msk.bf16.mxu0 %vm466_vm1, %v465_v1  ;;  %420 = vmatprep.mubr.msk.bf16.mxu1 %vm466_vm1, %v465_v1  ;;  %s441_s15 = scalar_lea.vmem %s319_s14, 512  ;;  %p446_p1 = scmp.lt.s32.totalorder %s319_s14, %s319_s14 }
  0x11   :  { %p442_p0 = scmp.ne.s32.totalorder %s319_s14, %s441_s15  ;;  %p447_p2 = scmp.lt.s32.totalorder %s441_s15, %s441_s15 }
  0x12   :  { %407 = vmatpush3.bf16.msra.mxu0 %v437_v12  ;;  %417 = vmatpush3.bf16.msra.mxu1 %v438_v13 }
  0x13   :  { %408 = vmatprep.subr.bf16.mxu0 %v465_v1  ;;  %418 = vmatprep.subr.bf16.mxu1 %v465_v1  ;;  %p448_p3 = por %p447_p2, %p446_p1 }
  0x15   :  { %p449_p4 = pnand %p448_p3, %p442_p0 }
  0x16   :  { %409 = vmatpush3.bf16.msra.mxu0 %v186_v16  ;;  %419 = vmatpush3.bf16.msra.mxu1 %v259_v17 }
  0x19   :  { %411 = vmatmul.mubr.msk.bf16.vlgmr.msra.gmra.mrb[4].mxu0 %vm37_vm2, %v16_v9  ;;  %421 = vmatmul.mubr.msk.bf16.vlgmr.msra.gmra.mrb[4].mxu1 %vm37_vm2, %v16_v9 }
  0xe0   :  { %v79_v18 = vpop.f32.mrb[0].mxu0  ;;  %v149_v19 = vpop.f32.mrb[0].mxu1 }
  0xe1   :  { %85 = vst [vmem:[#allocation2] sm:$0xff] %v79_v18  ;;  %86 = vadd.xlane.f32.xlu0 %v79_v18  ;;  %v392_v20 = vpop.f32.mrb[1].mxu0  ;;  %v88_v21 = vmul.f32 %v79_v18, %v79_v18  ;;  %156 = vst [vmem:[#allocation2 + $0x8] sm:$0xff] %v149_v19  ;;  %157 = vadd.xlane.f32.xlu1 %v149_v19  ;;  %v402_v23 = vpop.f32.mrb[1].mxu1  ;;  %v159_v24 = vmul.f32 %v149_v19, %v149_v19 }
  0xe2   :  { %v82_v22 = vpop.f32.mrb[2].mxu0  ;;  %v152_v26 = vpop.f32.mrb[2].mxu1 }
  0xe3   :  { %v393_v25 = vpop.f32.mrb[3].mxu0  ;;  %v403_v27 = vpop.f32.mrb[3].mxu1 }
  0xe5   :  { %89 = vadd.xlane.f32.xlu0 %v88_v21  ;;  %160 = vadd.xlane.f32.xlu1 %v159_v24 }
  0xec   :  { %v222_v28 = vpop.f32.mrb[4].mxu0  ;;  %v295_v29 = vpop.f32.mrb[4].mxu1 }
  0xed   :  { %229 = vst [vmem:[#allocation2 + $0x10] sm:$0xff] %v222_v28  ;;  %230 = vadd.xlane.f32.xlu0 %v222_v28  ;;  %v412_v30 = vpop.f32.mrb[5].mxu0  ;;  %v232_v31 = vmul.f32 %v222_v28, %v222_v28  ;;  %302 = vst [vmem:[#allocation2 + $0x18] sm:$0xff] %v295_v29  ;;  %v422_v33 = vpop.f32.mrb[5].mxu1  ;;  %v305_v36 = vmul.f32 %v295_v29, %v295_v29 }
  0xee   :  { %v225_v32 = vpop.f32.mrb[6].mxu0  ;;  %v298_v34 = vpop.f32.mrb[6].mxu1 }
  0xef   :  { %233 = vadd.xlane.f32.xlu1 %v232_v31  ;;  %v413_v35 = vpop.f32.mrb[7].mxu0  ;;  %v423_v37 = vpop.f32.mrb[7].mxu1 }
  0xf1   :  { %303 = vadd.xlane.f32.xlu0 %v295_v29 }
  0xf3   :  { %306 = vadd.xlane.f32.xlu1 %v305_v36 }
  0xf4   :  { %452 = shalt.err (!%p449_p4)
}
  0xf5   :  { %s453_s18 = scalar_lea.hbm %s566_s2, 512 }
  0xf6   :  { %p454_p5 = scmp.ne.s32.totalorder %s566_s2, %s453_s18  ;;  %p457_p6 = scmp.lt.u32.totalorder %s453_s18, %s566_s2 }
  0xf8   :  { %p459_p7 = pnand %p457_p6, %p454_p5 }
  0xfa   :  { %462 = shalt.err (!%p459_p7)
}
  0xfb   :  { %s468_s23 = smov 128   ;;  %s469_s24 = smov 8   ;;  %vm310_vm3 = vcmask 7168  }
  0xfc   :  { %324 = dma.vmem_to_hbm [thread:$0]  %s319_s14, 512, %s566_s2, [#allocation3], %s468_s23, %s468_s23, %s469_s24  }
 0x16e   :  { %v87_v38 = vpop.xlane.xlu0 %86  ;;  %v158_v39 = vpop.xlane.xlu1 %157 }
 0x16f   :  { %v162_v43 = vadd.f32 %v158_v39, %v87_v38 }
 0x172   :  { %v90_v40 = vpop.xlane.xlu0 %89  ;;  %v161_v41 = vpop.xlane.xlu1 %160 }
 0x173   :  { %v163_v45 = vadd.f32 %v161_v41, %v90_v40 }
 0x17a   :  { %v231_v42 = vpop.xlane.xlu0 %230 }
 0x17b   :  { %v235_v46 = vadd.f32 %v231_v42, %v162_v43 }
 0x17c   :  { %v234_v44 = vpop.xlane.xlu1 %233 }
 0x17d   :  { %v236_v48 = vadd.f32 %v234_v44, %v163_v45 }
 0x17e   :  { %v304_v47 = vpop.xlane.xlu0 %303 }
 0x17f   :  { %v308_v49 = vadd.f32 %v304_v47, %v235_v46 }
 0x180   :  { %v307_v50 = vpop.xlane.xlu1 %306 }
 0x181   :  { %311 = vst.msk [vmem:[%s567_s3] sm:$0xff] %vm310_vm3, %v308_v49  ;;  %v309_v51 = vadd.f32 %v307_v50, %v236_v48 }
 0x183   :  { %312 = vst.msk [vmem:[%s568_s4] sm:$0xff] %vm310_vm3, %v309_v51 }
 0x184   :  { %463 = dma.done.wait [#allocation3], 512  }
 0x185   :  { %464 = vsyncadd [#allocation3], 4294966784 }
 0x186   :  { %336 = vsyncpa [#allocation3], 1 }

</bundles_post_ra>
